<compile_context>
chip_gen: v5e
topology: v5e:2x2
jax: 0.10.0
libtpu: 0.0.40
codegen_flags: <defaults>
</compile_context>

<pallas_src>
from functools import partial

import jax
import jax.numpy as jnp
from jax import lax
from jax.experimental import pallas as pl
from jax.experimental.pallas import tpu as pltpu


def _head_kernel(x_ref, mask_ref, w1_ref, b1_ref, w2_ref, b2_ref, o_ref, *, shifts):
    # x_ref   : (Cin, L)      L = imgs_per_block * H*W, lane-dense
    # mask_ref: (9, 1, L)     precomputed per-tap boundary masks (compute dtype)
    # w1_ref  : (9, Cf, Cin)  3x3 conv weights, tap-major (dy, dx)
    # b1_ref  : (Cf, 1)  f32
    # w2_ref  : (Cout, Cf)    1x1 conv weights
    # b2_ref  : (Cout, 1) f32
    # o_ref   : (Cout, L)     lane-dense output block
    x2d = x_ref[...]                                   # (Cin, L)
    cf = w1_ref.shape[1]
    L = x2d.shape[1]

    # 3x3 conv: 9 rolled taps, each masked (one vmul) and accumulated via an MXU
    # matmul over the Cin contraction.  No (9*Cin, L) im2col is ever materialized.
    acc = jnp.zeros((cf, L), jnp.float32)
    for t, shift in enumerate(shifts):                 # static, fully unrolled (9 taps)
        rolled = pltpu.roll(x2d, shift, axis=1) if shift else x2d
        masked = rolled * mask_ref[t]                  # (Cin, L) * (1, L)
        acc = acc + jnp.dot(w1_ref[t], masked, preferred_element_type=jnp.float32)

    feat = jnp.maximum(acc + b1_ref[...], 0.0)         # bias + ReLU in f32, (Cf, L)

    # 1x1 conv == channel matmul; bias + sigmoid in f32, then cast to output dtype.
    out = jnp.dot(w2_ref[...], feat.astype(w2_ref.dtype),
                  preferred_element_type=jnp.float32)  # (Cout, L)
    out = out + b2_ref[...]
    o_ref[...] = jax.nn.sigmoid(out).astype(o_ref.dtype)


def _pick_imgs_per_block(n, hw, cin, cf, cout, in_bytes, out_bytes,
                         vmem_budget_bytes=20 * 1024 * 1024):
    """Largest divisor of n whose block footprint fits the VMEM budget, preferring a
    choice that leaves >= 2 grid steps so v7x's second TensorCore gets work."""
    per_img = hw * (2 * cin * in_bytes        # double-buffered input block
                    + 2 * cout * out_bytes    # double-buffered output block
                    + 9 * in_bytes            # precomputed boundary masks
                    + cf * 4                  # f32 accumulator
                    + 2 * cin * in_bytes)     # rolled + masked tap temporaries
    fits = [d for d in range(1, n + 1)
            if n % d == 0 and d * per_img <= vmem_budget_bytes]
    if not fits:
        return 1
    multi = [d for d in fits if n // d >= 2]
    return max(multi) if multi else max(fits)


def contextnet_head_forward(x_nchw, w1, b1, w2, b2, *,
                            compute_dtype=jnp.float32,
                            out_dtype=jnp.float32,
                            imgs_per_block=None):
    """x_nchw: (N, Cin, H, W) -> (N, num_classes, H, W) heatmap in [0, 1].

    compute_dtype: bf16 on v6e/v7x halves matmul-operand traffic (keep f32 on v5e).
    out_dtype: bf16 halves heatmap writeback bytes (sigmoid output is bf16-benign).
    """
    N, Cin, H, W = x_nchw.shape
    Cf = w1.shape[3]
    Cout = w2.shape[1]
    HW = H * W

    if imgs_per_block is None:
        imgs_per_block = _pick_imgs_per_block(
            N, HW, Cin, Cf, Cout,
            jnp.dtype(compute_dtype).itemsize, jnp.dtype(out_dtype).itemsize)
    tile_l = imgs_per_block * HW
    n_tiles = N // imgs_per_block
    if n_tiles > 1 and tile_l % 128 != 0:
        # Lane tile must be 128-aligned unless it spans the full array.
        imgs_per_block, tile_l, n_tiles = N, N * HW, 1

    # TODO(synk): for very large per-image H*W (e.g. 512x512 with wide channels) add an
    # H-row tile axis with a +/-1-row halo so a single image's block also fits VMEM.

    # (N, Cin, H, W) -> (Cin, N*HW): channels on sublanes, batch*spatial on lanes.
    x_flat = jnp.transpose(x_nchw, (1, 0, 2, 3)).reshape(Cin, N * HW).astype(compute_dtype)

    # Precomputed boundary masks + roll shifts.  Per-image coordinates (pos % HW) make
    # the masks identical for every block (blocks contain whole images) and guarantee
    # the rolls never mix data from neighbouring images.
    pos = jnp.arange(tile_l, dtype=jnp.int32) % HW
    yy, xx = pos // W, pos % W
    mask_rows, shifts = [], []
    for dy in (-1, 0, 1):
        for dx in (-1, 0, 1):
            valid = ((yy + dy >= 0) & (yy + dy < H) &
                     (xx + dx >= 0) & (xx + dx < W))
            mask_rows.append(valid)
            shifts.append((-(dy * W + dx)) % tile_l)
    mask = jnp.stack(mask_rows, 0).astype(compute_dtype).reshape(9, 1, tile_l)

    # HWIO -> (9, Cf, Cin), tap-major in (dy, dx) order matching `shifts`.
    w1_taps = jnp.transpose(w1, (0, 1, 3, 2)).reshape(9, Cf, Cin).astype(compute_dtype)
    w2r = jnp.transpose(w2, (1, 0)).astype(compute_dtype)        # (Cout, Cf)
    b1r = b1.reshape(Cf, 1).astype(jnp.float32)
    b2r = b2.reshape(Cout, 1).astype(jnp.float32)

    out_flat = pl.pallas_call(
        partial(_head_kernel, shifts=tuple(shifts)),
        out_shape=jax.ShapeDtypeStruct((Cout, N * HW), out_dtype),
        grid_spec=pltpu.PrefetchScalarGridSpec(
            num_scalar_prefetch=0,
            grid=(n_tiles,),                 # batch-block axis; "parallel" for megacore
            in_specs=[
                pl.BlockSpec((Cin, tile_l), lambda i: (0, i)),
                pl.BlockSpec((9, 1, tile_l), lambda i: (0, 0, 0)),
                pl.BlockSpec((9, Cf, Cin), lambda i: (0, 0, 0)),
                pl.BlockSpec((Cf, 1), lambda i: (0, 0)),
                pl.BlockSpec((Cout, Cf), lambda i: (0, 0)),
                pl.BlockSpec((Cout, 1), lambda i: (0, 0)),
            ],
            out_specs=pl.BlockSpec((Cout, tile_l), lambda i: (0, i)),
        ),
        compiler_params=pltpu.CompilerParams(
            dimension_semantics=("parallel",),
            vmem_limit_bytes=48 * 1024 * 1024),
    )(x_flat, mask, w1_taps, b1r, w2r, b2r)

    # (Cout, N*HW) -> (N, Cout, H, W)
    return jnp.transpose(out_flat.reshape(Cout, N, H, W), (1, 0, 2, 3))


def _reference(x_nchw, w1, b1, w2, b2):
    """Pure-JAX reference using lax.conv (for correctness check)."""
    x = jnp.transpose(x_nchw, (0, 2, 3, 1))
    y = lax.conv_general_dilated(
        x, w1, window_strides=(1, 1), padding=((1, 1), (1, 1)),
        dimension_numbers=('NHWC', 'HWIO', 'NHWC')) + b1
    y = jnp.maximum(y, 0.0)
    z = lax.conv_general_dilated(
        y, w2.reshape(1, 1, *w2.shape), window_strides=(1, 1), padding='VALID',
        dimension_numbers=('NHWC', 'HWIO', 'NHWC')) + b2
    z = jax.nn.sigmoid(z)
    return jnp.transpose(z, (0, 3, 1, 2))


if __name__ == "__main__":
    # Module hyper-parameters (synthetic, small)
    in_channel, feat_channel, num_classes = 4, 8, 6
    N, H, W = 2, 16, 16

    key = jax.random.PRNGKey(0)
    k_x, k_w1, k_b1, k_w2, k_b2 = jax.random.split(key, 5)

    x = jax.random.normal(k_x, (N, in_channel, H, W), jnp.float32)
    # Conv2d(in_channel, feat_channel, 3, padding=1) -> HWIO weights + bias
    w1 = jax.random.normal(k_w1, (3, 3, in_channel, feat_channel), jnp.float32) * 0.1
    b1 = jax.random.normal(k_b1, (feat_channel,), jnp.float32) * 0.1
    # Conv2d(feat_channel, num_classes, 1) -> (Cf, Cout) weights + bias
    w2 = jax.random.normal(k_w2, (feat_channel, num_classes), jnp.float32) * 0.1
    b2 = jax.random.normal(k_b2, (num_classes,), jnp.float32) * 0.1

    ref = _reference(x, w1, b1, w2, b2)

    # f32 path (tight tolerance)
    out = contextnet_head_forward(x, w1, b1, w2, b2)
    out = jax.block_until_ready(out)
    assert out.shape == (N, num_classes, H, W)
    assert jnp.allclose(out, ref, atol=3e-5, rtol=3e-5), "f32 mismatch vs reference"

    # bf16 compute + bf16 heatmap output (v6e/v7x traffic saver), looser tolerance
    out_bf16 = contextnet_head_forward(
        x, w1, b1, w2, b2, compute_dtype=jnp.bfloat16, out_dtype=jnp.bfloat16)
    out_bf16 = jax.block_until_ready(out_bf16)
    assert out_bf16.dtype == jnp.bfloat16
    assert jnp.allclose(out_bf16.astype(jnp.float32), ref, atol=3e-2, rtol=3e-2), \
        "bf16 mismatch vs reference"

    print("KERNEL_OK")
</pallas_src>

<mosaic_0001>
module attributes {stable_mosaic.version = 11 : i64} {
  func.func @_head_kernel(%arg0: i32, %arg1: memref<4x256xf32, #tpu.memory_space<vmem>>, %arg2: memref<9x1x256xf32, #tpu.memory_space<vmem>>, %arg3: memref<9x8x4xf32, #tpu.memory_space<vmem>>, %arg4: memref<8x1xf32, #tpu.memory_space<vmem>>, %arg5: memref<6x8xf32, #tpu.memory_space<vmem>>, %arg6: memref<6x1xf32, #tpu.memory_space<vmem>>, %arg7: memref<6x256xf32, #tpu.memory_space<vmem>>) attributes {dimension_semantics = [#tpu.dimension_semantics<parallel>], iteration_bounds = array<i64: 2>, scalar_prefetch = 0 : i64, scratch_operands = 0 : i64, tpu.core_type = #tpu.core_type<tc>, window_params = [{transform_indices = @transform_0, window_bounds = array<i64: 4, 256>}, {pipeline_mode = #tpu.pipeline_mode<synchronous>, transform_indices = @transform_1, window_bounds = array<i64: 9, 1, 256>}, {pipeline_mode = #tpu.pipeline_mode<synchronous>, transform_indices = @transform_2, window_bounds = array<i64: 9, 8, 4>}, {pipeline_mode = #tpu.pipeline_mode<synchronous>, transform_indices = @transform_3, window_bounds = array<i64: 8, 1>}, {pipeline_mode = #tpu.pipeline_mode<synchronous>, transform_indices = @transform_4, window_bounds = array<i64: 6, 8>}, {pipeline_mode = #tpu.pipeline_mode<synchronous>, transform_indices = @transform_5, window_bounds = array<i64: 6, 1>}, {transform_indices = @transform_6, window_bounds = array<i64: 6, 256>}]} {
    %c0 = arith.constant 0 : index
    %c0_0 = arith.constant 0 : index
    %0 = vector.load %arg1[%c0, %c0_0] : memref<4x256xf32, #tpu.memory_space<vmem>>, vector<4x256xf32>
    %cst = arith.constant 0.000000e+00 : f32
    %1 = vector.broadcast %cst : f32 to vector<8x256xf32>
    %c17_i32 = arith.constant 17 : i32
    %2 = tpu.dynamic_rotate %0 by %c17_i32 dim 1 : vector<4x256xf32>, i32 -> vector<4x256xf32>
    %c0_1 = arith.constant 0 : index
    %c0_2 = arith.constant 0 : index
    %c0_3 = arith.constant 0 : index
    %3 = vector.load %arg2[%c0_1, %c0_2, %c0_3] : memref<9x1x256xf32, #tpu.memory_space<vmem>>, vector<1x1x256xf32>
    %4 = vector.shape_cast %3 : vector<1x1x256xf32> to vector<1x256xf32>
    %5 = vector.broadcast %4 : vector<1x256xf32> to vector<4x256xf32>
    %6 = arith.mulf %2, %5 : vector<4x256xf32>
    %c0_4 = arith.constant 0 : index
    %c0_5 = arith.constant 0 : index
    %c0_6 = arith.constant 0 : index
    %7 = vector.load %arg3[%c0_4, %c0_5, %c0_6] : memref<9x8x4xf32, #tpu.memory_space<vmem>>, vector<1x8x4xf32>
    %8 = vector.shape_cast %7 : vector<1x8x4xf32> to vector<8x4xf32>
    %cst_7 = arith.constant dense<0.000000e+00> : vector<8x256xf32>
    %9 = tpu.matmul %8, %6, %cst_7 {dimension_numbers = #tpu.dot_dimension_numbers<[1], [0], [0], [1], [0, 0, 1, 1], [], []>} : vector<8x4xf32>, vector<4x256xf32>, vector<8x256xf32> -> vector<8x256xf32>
    %10 = arith.addf %1, %9 : vector<8x256xf32>
    %c16_i32 = arith.constant 16 : i32
    %11 = tpu.dynamic_rotate %0 by %c16_i32 dim 1 : vector<4x256xf32>, i32 -> vector<4x256xf32>
    %c1 = arith.constant 1 : index
    %c0_8 = arith.constant 0 : index
    %c0_9 = arith.constant 0 : index
    %12 = vector.load %arg2[%c1, %c0_8, %c0_9] : memref<9x1x256xf32, #tpu.memory_space<vmem>>, vector<1x1x256xf32>
    %13 = vector.shape_cast %12 : vector<1x1x256xf32> to vector<1x256xf32>
    %14 = vector.broadcast %13 : vector<1x256xf32> to vector<4x256xf32>
    %15 = arith.mulf %11, %14 : vector<4x256xf32>
    %c1_10 = arith.constant 1 : index
    %c0_11 = arith.constant 0 : index
    %c0_12 = arith.constant 0 : index
    %16 = vector.load %arg3[%c1_10, %c0_11, %c0_12] : memref<9x8x4xf32, #tpu.memory_space<vmem>>, vector<1x8x4xf32>
    %17 = vector.shape_cast %16 : vector<1x8x4xf32> to vector<8x4xf32>
    %cst_13 = arith.constant dense<0.000000e+00> : vector<8x256xf32>
    %18 = tpu.matmul %17, %15, %cst_13 {dimension_numbers = #tpu.dot_dimension_numbers<[1], [0], [0], [1], [0, 0, 1, 1], [], []>} : vector<8x4xf32>, vector<4x256xf32>, vector<8x256xf32> -> vector<8x256xf32>
    %19 = arith.addf %10, %18 : vector<8x256xf32>
    %c15_i32 = arith.constant 15 : i32
    %20 = tpu.dynamic_rotate %0 by %c15_i32 dim 1 : vector<4x256xf32>, i32 -> vector<4x256xf32>
    %c2 = arith.constant 2 : index
    %c0_14 = arith.constant 0 : index
    %c0_15 = arith.constant 0 : index
    %21 = vector.load %arg2[%c2, %c0_14, %c0_15] : memref<9x1x256xf32, #tpu.memory_space<vmem>>, vector<1x1x256xf32>
    %22 = vector.shape_cast %21 : vector<1x1x256xf32> to vector<1x256xf32>
    %23 = vector.broadcast %22 : vector<1x256xf32> to vector<4x256xf32>
    %24 = arith.mulf %20, %23 : vector<4x256xf32>
    %c2_16 = arith.constant 2 : index
    %c0_17 = arith.constant 0 : index
    %c0_18 = arith.constant 0 : index
    %25 = vector.load %arg3[%c2_16, %c0_17, %c0_18] : memref<9x8x4xf32, #tpu.memory_space<vmem>>, vector<1x8x4xf32>
    %26 = vector.shape_cast %25 : vector<1x8x4xf32> to vector<8x4xf32>
    %cst_19 = arith.constant dense<0.000000e+00> : vector<8x256xf32>
    %27 = tpu.matmul %26, %24, %cst_19 {dimension_numbers = #tpu.dot_dimension_numbers<[1], [0], [0], [1], [0, 0, 1, 1], [], []>} : vector<8x4xf32>, vector<4x256xf32>, vector<8x256xf32> -> vector<8x256xf32>
    %28 = arith.addf %19, %27 : vector<8x256xf32>
    %c1_i32 = arith.constant 1 : i32
    %29 = tpu.dynamic_rotate %0 by %c1_i32 dim 1 : vector<4x256xf32>, i32 -> vector<4x256xf32>
    %c3 = arith.constant 3 : index
    %c0_20 = arith.constant 0 : index
    %c0_21 = arith.constant 0 : index
    %30 = vector.load %arg2[%c3, %c0_20, %c0_21] : memref<9x1x256xf32, #tpu.memory_space<vmem>>, vector<1x1x256xf32>
    %31 = vector.shape_cast %30 : vector<1x1x256xf32> to vector<1x256xf32>
    %32 = vector.broadcast %31 : vector<1x256xf32> to vector<4x256xf32>
    %33 = arith.mulf %29, %32 : vector<4x256xf32>
    %c3_22 = arith.constant 3 : index
    %c0_23 = arith.constant 0 : index
    %c0_24 = arith.constant 0 : index
    %34 = vector.load %arg3[%c3_22, %c0_23, %c0_24] : memref<9x8x4xf32, #tpu.memory_space<vmem>>, vector<1x8x4xf32>
    %35 = vector.shape_cast %34 : vector<1x8x4xf32> to vector<8x4xf32>
    %cst_25 = arith.constant dense<0.000000e+00> : vector<8x256xf32>
    %36 = tpu.matmul %35, %33, %cst_25 {dimension_numbers = #tpu.dot_dimension_numbers<[1], [0], [0], [1], [0, 0, 1, 1], [], []>} : vector<8x4xf32>, vector<4x256xf32>, vector<8x256xf32> -> vector<8x256xf32>
    %37 = arith.addf %28, %36 : vector<8x256xf32>
    %c4 = arith.constant 4 : index
    %c0_26 = arith.constant 0 : index
    %c0_27 = arith.constant 0 : index
    %38 = vector.load %arg2[%c4, %c0_26, %c0_27] : memref<9x1x256xf32, #tpu.memory_space<vmem>>, vector<1x1x256xf32>
    %39 = vector.shape_cast %38 : vector<1x1x256xf32> to vector<1x256xf32>
    %40 = vector.broadcast %39 : vector<1x256xf32> to vector<4x256xf32>
    %41 = arith.mulf %0, %40 : vector<4x256xf32>
    %c4_28 = arith.constant 4 : index
    %c0_29 = arith.constant 0 : index
    %c0_30 = arith.constant 0 : index
    %42 = vector.load %arg3[%c4_28, %c0_29, %c0_30] : memref<9x8x4xf32, #tpu.memory_space<vmem>>, vector<1x8x4xf32>
    %43 = vector.shape_cast %42 : vector<1x8x4xf32> to vector<8x4xf32>
    %cst_31 = arith.constant dense<0.000000e+00> : vector<8x256xf32>
    %44 = tpu.matmul %43, %41, %cst_31 {dimension_numbers = #tpu.dot_dimension_numbers<[1], [0], [0], [1], [0, 0, 1, 1], [], []>} : vector<8x4xf32>, vector<4x256xf32>, vector<8x256xf32> -> vector<8x256xf32>
    %45 = arith.addf %37, %44 : vector<8x256xf32>
    %c255_i32 = arith.constant 255 : i32
    %46 = tpu.dynamic_rotate %0 by %c255_i32 dim 1 : vector<4x256xf32>, i32 -> vector<4x256xf32>
    %c5 = arith.constant 5 : index
    %c0_32 = arith.constant 0 : index
    %c0_33 = arith.constant 0 : index
    %47 = vector.load %arg2[%c5, %c0_32, %c0_33] : memref<9x1x256xf32, #tpu.memory_space<vmem>>, vector<1x1x256xf32>
    %48 = vector.shape_cast %47 : vector<1x1x256xf32> to vector<1x256xf32>
    %49 = vector.broadcast %48 : vector<1x256xf32> to vector<4x256xf32>
    %50 = arith.mulf %46, %49 : vector<4x256xf32>
    %c5_34 = arith.constant 5 : index
    %c0_35 = arith.constant 0 : index
    %c0_36 = arith.constant 0 : index
    %51 = vector.load %arg3[%c5_34, %c0_35, %c0_36] : memref<9x8x4xf32, #tpu.memory_space<vmem>>, vector<1x8x4xf32>
    %52 = vector.shape_cast %51 : vector<1x8x4xf32> to vector<8x4xf32>
    %cst_37 = arith.constant dense<0.000000e+00> : vector<8x256xf32>
    %53 = tpu.matmul %52, %50, %cst_37 {dimension_numbers = #tpu.dot_dimension_numbers<[1], [0], [0], [1], [0, 0, 1, 1], [], []>} : vector<8x4xf32>, vector<4x256xf32>, vector<8x256xf32> -> vector<8x256xf32>
    %54 = arith.addf %45, %53 : vector<8x256xf32>
    %c241_i32 = arith.constant 241 : i32
    %55 = tpu.dynamic_rotate %0 by %c241_i32 dim 1 : vector<4x256xf32>, i32 -> vector<4x256xf32>
    %c6 = arith.constant 6 : index
    %c0_38 = arith.constant 0 : index
    %c0_39 = arith.constant 0 : index
    %56 = vector.load %arg2[%c6, %c0_38, %c0_39] : memref<9x1x256xf32, #tpu.memory_space<vmem>>, vector<1x1x256xf32>
    %57 = vector.shape_cast %56 : vector<1x1x256xf32> to vector<1x256xf32>
    %58 = vector.broadcast %57 : vector<1x256xf32> to vector<4x256xf32>
    %59 = arith.mulf %55, %58 : vector<4x256xf32>
    %c6_40 = arith.constant 6 : index
    %c0_41 = arith.constant 0 : index
    %c0_42 = arith.constant 0 : index
    %60 = vector.load %arg3[%c6_40, %c0_41, %c0_42] : memref<9x8x4xf32, #tpu.memory_space<vmem>>, vector<1x8x4xf32>
    %61 = vector.shape_cast %60 : vector<1x8x4xf32> to vector<8x4xf32>
    %cst_43 = arith.constant dense<0.000000e+00> : vector<8x256xf32>
    %62 = tpu.matmul %61, %59, %cst_43 {dimension_numbers = #tpu.dot_dimension_numbers<[1], [0], [0], [1], [0, 0, 1, 1], [], []>} : vector<8x4xf32>, vector<4x256xf32>, vector<8x256xf32> -> vector<8x256xf32>
    %63 = arith.addf %54, %62 : vector<8x256xf32>
    %c240_i32 = arith.constant 240 : i32
    %64 = tpu.dynamic_rotate %0 by %c240_i32 dim 1 : vector<4x256xf32>, i32 -> vector<4x256xf32>
    %c7 = arith.constant 7 : index
    %c0_44 = arith.constant 0 : index
    %c0_45 = arith.constant 0 : index
    %65 = vector.load %arg2[%c7, %c0_44, %c0_45] : memref<9x1x256xf32, #tpu.memory_space<vmem>>, vector<1x1x256xf32>
    %66 = vector.shape_cast %65 : vector<1x1x256xf32> to vector<1x256xf32>
    %67 = vector.broadcast %66 : vector<1x256xf32> to vector<4x256xf32>
    %68 = arith.mulf %64, %67 : vector<4x256xf32>
    %c7_46 = arith.constant 7 : index
    %c0_47 = arith.constant 0 : index
    %c0_48 = arith.constant 0 : index
    %69 = vector.load %arg3[%c7_46, %c0_47, %c0_48] : memref<9x8x4xf32, #tpu.memory_space<vmem>>, vector<1x8x4xf32>
    %70 = vector.shape_cast %69 : vector<1x8x4xf32> to vector<8x4xf32>
    %cst_49 = arith.constant dense<0.000000e+00> : vector<8x256xf32>
    %71 = tpu.matmul %70, %68, %cst_49 {dimension_numbers = #tpu.dot_dimension_numbers<[1], [0], [0], [1], [0, 0, 1, 1], [], []>} : vector<8x4xf32>, vector<4x256xf32>, vector<8x256xf32> -> vector<8x256xf32>
    %72 = arith.addf %63, %71 : vector<8x256xf32>
    %c239_i32 = arith.constant 239 : i32
    %73 = tpu.dynamic_rotate %0 by %c239_i32 dim 1 : vector<4x256xf32>, i32 -> vector<4x256xf32>
    %c8 = arith.constant 8 : index
    %c0_50 = arith.constant 0 : index
    %c0_51 = arith.constant 0 : index
    %74 = vector.load %arg2[%c8, %c0_50, %c0_51] : memref<9x1x256xf32, #tpu.memory_space<vmem>>, vector<1x1x256xf32>
    %75 = vector.shape_cast %74 : vector<1x1x256xf32> to vector<1x256xf32>
    %76 = vector.broadcast %75 : vector<1x256xf32> to vector<4x256xf32>
    %77 = arith.mulf %73, %76 : vector<4x256xf32>
    %c8_52 = arith.constant 8 : index
    %c0_53 = arith.constant 0 : index
    %c0_54 = arith.constant 0 : index
    %78 = vector.load %arg3[%c8_52, %c0_53, %c0_54] : memref<9x8x4xf32, #tpu.memory_space<vmem>>, vector<1x8x4xf32>
    %79 = vector.shape_cast %78 : vector<1x8x4xf32> to vector<8x4xf32>
    %cst_55 = arith.constant dense<0.000000e+00> : vector<8x256xf32>
    %80 = tpu.matmul %79, %77, %cst_55 {dimension_numbers = #tpu.dot_dimension_numbers<[1], [0], [0], [1], [0, 0, 1, 1], [], []>} : vector<8x4xf32>, vector<4x256xf32>, vector<8x256xf32> -> vector<8x256xf32>
    %81 = arith.addf %72, %80 : vector<8x256xf32>
    %c0_56 = arith.constant 0 : index
    %c0_57 = arith.constant 0 : index
    %82 = vector.load %arg4[%c0_56, %c0_57] : memref<8x1xf32, #tpu.memory_space<vmem>>, vector<8x1xf32>
    %83 = vector.broadcast %82 : vector<8x1xf32> to vector<8x256xf32>
    %84 = arith.addf %81, %83 : vector<8x256xf32>
    %cst_58 = arith.constant 0.000000e+00 : f32
    %85 = vector.broadcast %cst_58 : f32 to vector<8x256xf32>
    %86 = arith.maximumf %84, %85 : vector<8x256xf32>
    %c0_59 = arith.constant 0 : index
    %c0_60 = arith.constant 0 : index
    %87 = vector.load %arg5[%c0_59, %c0_60] : memref<6x8xf32, #tpu.memory_space<vmem>>, vector<6x8xf32>
    %cst_61 = arith.constant dense<0.000000e+00> : vector<6x256xf32>
    %88 = tpu.matmul %87, %86, %cst_61 {dimension_numbers = #tpu.dot_dimension_numbers<[1], [0], [0], [1], [0, 0, 1, 1], [], []>} : vector<6x8xf32>, vector<8x256xf32>, vector<6x256xf32> -> vector<6x256xf32>
    %c0_62 = arith.constant 0 : index
    %c0_63 = arith.constant 0 : index
    %89 = vector.load %arg6[%c0_62, %c0_63] : memref<6x1xf32, #tpu.memory_space<vmem>>, vector<6x1xf32>
    %90 = vector.broadcast %89 : vector<6x1xf32> to vector<6x256xf32>
    %91 = arith.addf %88, %90 : vector<6x256xf32>
    %92 = arith.negf %91 : vector<6x256xf32>
    %93 = math.exp %92 : vector<6x256xf32>
    %cst_64 = arith.constant 1.000000e+00 : f32
    %94 = vector.broadcast %cst_64 : f32 to vector<6x256xf32>
    %95 = arith.addf %94, %93 : vector<6x256xf32>
    %96 = arith.divf %94, %95 : vector<6x256xf32>
    %c0_65 = arith.constant 0 : index
    %c0_66 = arith.constant 0 : index
    %97 = vector.load %arg7[%c0_65, %c0_66] : memref<6x256xf32, #tpu.memory_space<vmem>>, vector<6x256xf32>
    tpu.vector_store %arg7[%c0_65, %c0_66], %96 {strides = array<i32>} : memref<6x256xf32, #tpu.memory_space<vmem>>, vector<6x256xf32>,
    return
  }
  func.func @transform_0(%arg0: i32) -> (i32, i32) {
    %c0_i32 = arith.constant 0 : i32
    %c0_i32_0 = arith.constant 0 : i32
    return %c0_i32, %arg0 : i32, i32
  }
  func.func @transform_1(%arg0: i32) -> (i32, i32, i32) {
    %c0_i32 = arith.constant 0 : i32
    %c0_i32_0 = arith.constant 0 : i32
    %c0_i32_1 = arith.constant 0 : i32
    %c0_i32_2 = arith.constant 0 : i32
    return %c0_i32, %c0_i32_0, %c0_i32_1 : i32, i32, i32
  }
  func.func @transform_2(%arg0: i32) -> (i32, i32, i32) {
    %c0_i32 = arith.constant 0 : i32
    %c0_i32_0 = arith.constant 0 : i32
    %c0_i32_1 = arith.constant 0 : i32
    %c0_i32_2 = arith.constant 0 : i32
    return %c0_i32, %c0_i32_0, %c0_i32_1 : i32, i32, i32
  }
  func.func @transform_3(%arg0: i32) -> (i32, i32) {
    %c0_i32 = arith.constant 0 : i32
    %c0_i32_0 = arith.constant 0 : i32
    %c0_i32_1 = arith.constant 0 : i32
    return %c0_i32, %c0_i32_0 : i32, i32
  }
  func.func @transform_4(%arg0: i32) -> (i32, i32) {
    %c0_i32 = arith.constant 0 : i32
    %c0_i32_0 = arith.constant 0 : i32
    %c0_i32_1 = arith.constant 0 : i32
    return %c0_i32, %c0_i32_0 : i32, i32
  }
  func.func @transform_5(%arg0: i32) -> (i32, i32) {
    %c0_i32 = arith.constant 0 : i32
    %c0_i32_0 = arith.constant 0 : i32
    %c0_i32_1 = arith.constant 0 : i32
    return %c0_i32, %c0_i32_0 : i32, i32
  }
  func.func @transform_6(%arg0: i32) -> (i32, i32) {
    %c0_i32 = arith.constant 0 : i32
    %c0_i32_0 = arith.constant 0 : i32
    return %c0_i32, %arg0 : i32, i32
  }
}

</mosaic_0001>

<bundles_post_ra>
// kernel: tpu_custom_call.1
= control target key start
LH: loop header
LB: loop body
LE: loop exit
PB: predicated region body
PF: predicated region fallthrough
CT: control target
= control target key end

     0   :  { %11 = vsyncpa [#allocation3], 0  ;;  %s1526_s0 = inlined_call_operand.vmem [shape: f32[4,512], index: 0, kind: input, shape index: {}]   ;;  %s1527_s1 = inlined_call_operand.vmem [shape: f32[9,1,256], index: 1, kind: input, shape index: {}]   ;;  %s1528_s2 = inlined_call_operand.vmem [shape: f32[9,8,4], index: 2, kind: input, shape index: {}]   ;;  %s1529_s3 = inlined_call_operand.vmem [shape: f32[8,1], index: 3, kind: input, shape index: {}]   ;;  %s1530_s4 = inlined_call_operand.vmem [shape: f32[6,8], index: 4, kind: input, shape index: {}]   ;;  %s1531_s5 = inlined_call_operand.vmem [shape: f32[6,1], index: 5, kind: input, shape index: {}]   ;;  %s1532_s6 = inlined_call_operand.hbm [shape: f32[6,512], index: 6, kind: output, shape index: {}]  }
   0x1   :  { %13 = vsyncpa [#allocation3 + $0x1], 0  ;;  %s1322_s21 = smov 0   ;;  %s1324_s22 = smov 0  }
   0x2   :  { %s1326_s23 = smov 0   ;;  %s1328_s24 = smov 0  }
   0x3 LB: > { %s1343_s25 = sadd.s32 4294967295, %s1276_s24   ;;  %s1086_s26 = sadd.s32 4294967294, %s1276_s24   ;;  %s1276_s24 = sphi %s1328_s24, %s1538_s24   ;;  %s1272_s23 = sphi %s1326_s23, %s1537_s23   ;;  %s1268_s22 = sphi %s1324_s22, %s1536_s22   ;;  %s1264_s21 = sphi %s1322_s21, %s1535_s21  }
   0x4   : > { %s1347_s27 = sadd.s32 1, %s1276_s24   ;;  %s157_s28 = sadd.s32 1, %s1272_s23 }
   0x5   : > { %s154_s29 = ssub.s32 %s1276_s24, %s1347_s27  ;;  %p167_p0 = scmp.ne.s32.totalorder %s1272_s23, %s1268_s22 }
   0x6   : > { %p155_p1 = scmp.eq.s32.totalorder %s154_s29, 0  ;;  %p168_p2 = scmp.eq.s32.totalorder %s1343_s25, 1 }
   0x7   : > { %p173_p3 = scmp.ne.s32.totalorder %s1268_s22, %s1264_s21  ;;  %p174_p4 = scmp.eq.s32.totalorder %s1086_s26, 1 }
   0x8   : > { %s1358_s30 = scalar_select %p155_p1, %s1272_s23, %s157_s28  }
   0x9   : > { %p1360_p5 = por %p168_p2, %p167_p0  ;;  %p1364_p6 = por %p174_p4, %p173_p3 }
   0xa   : > { %p1089_p7 = scmp.ge.s32.totalorder %s1276_s24, 1  ;;  %p216_p8 = scmp.lt.s32.totalorder %s1276_s24, 3 }
   0xc   : > { %p217_p9 = pnand %p1089_p7, %p216_p8 }
   0xd   : > { %s1091_s9 = sshll.u32 (!%p217_p9), %s1343_s25, 1  ;;  %s1278_s14 = smov (!%p217_p9), 17  }
   0xe   : > { %220 = sbr.rel (%p217_p9) target bundleno = 513 (0x201), region = 44  ;;  %p247_p10 = scmp.lt.s32.totalorder (!%p217_p9), %s1091_s9, 3 }
   0xf   : > { %s1279_s17 = smov (!%p217_p9), 16   ;;  %s1280_s18 = smov (!%p217_p9), 15  }
  0x10   : > { %s1281_s19 = smov (!%p217_p9), 1   ;;  %s1282_s20 = smov (!%p217_p9), 127  }
  0x11   : > { %s1283_s26 = smov (!%p217_p9), 113   ;;  %s1284_s28 = smov (!%p217_p9), 112  }
  0x12   : > { %s1285_s29 = smov (!%p217_p9), 111  }
  0x13   : > { %s1540_s9 = smov (!%p247_p10, %s1091_s9), 3  ;;  %v1115_v3 = vld [vmem:[%s1527_s1 + $0x8] sm:$0x3]  ;;  %vm305_vm0 = vcmask 1043456   ;;  %v264_v25 = vlaneseq  ;;  %v269_v29 = vld [vmem:[%s1527_s1] sm:$0x3] }
  0x14   : > { %s1092_s10 = sshll.u32 %s1540_s9, 2  ;;  %v553_v6 = vperm.slane %v1115_v3, 1  ;;  %v552_v7 = vperm.slane %v1115_v3, 0  ;;  %v271_v30 = vperm.slane %v269_v29, 0  ;;  %v272_v31 = vperm.slane %v269_v29, 1  ;;  %v277_v38 = vld [vmem:[%s1528_s2] sm:$0xff] }
  0x15   : > { %s250_s13 = scalar_lea.vmem %s1526_s0, %s1092_s10  ;;  %v1382_v27 = vand.u32 127, %v264_v25  ;;  %vm301_vm2 = vcmask 31744   ;;  %v1093_v39 = vld [vmem:[%s1527_s1 + $0x2] sm:$0x3]  ;;  %v1103_v40 = vld [vmem:[%s1527_s1 + $0x4] sm:$0x3] }
  0x16   : > { %v253_v0 = vld [vmem:[%s250_s13] sm:$0xff]  ;;  %v554_v8 = vrot.slane %v553_v6, 4  ;;  %v293_v42 = vperm.slane %v1093_v39, 0  ;;  %v294_v43 = vperm.slane %v1093_v39, 1  ;;  %v416_v44 = vperm.slane %v1103_v40, 0  ;;  %v1094_v53 = vld [vmem:[%s1528_s2 + $0x8] sm:$0xff] }
  0x17   : > { %255 = vst [vmem:[#allocation1] ss:$2 sm:$0xff] %v253_v0  ;;  %vm266_vm1 = vcmp.lt.s32.totalorder %v1382_v27, 17  ;;  %vm410_vm3 = vcmp.lt.s32.totalorder %v1382_v27, 15  ;;  %vm287_vm4 = vcmp.lt.s32.totalorder %v1382_v27, 16  ;;  %v417_v45 = vperm.slane %v1103_v40, 1 }
  0x18   : > { %v555_v11 = vsel %vm305_vm0, %v552_v7, %v554_v8  ;;  %v1109_v56 = vld [vmem:[%s1527_s1 + $0x6] sm:$0x3]  ;;  %vm484_vm5 = vcmp.lt.s32.totalorder %v1382_v27, 1  ;;  %vm622_vm6 = vcmp.lt.s32.totalorder %v1382_v27, 127  ;;  %vm696_vm7 = vcmp.lt.s32.totalorder %v1382_v27, 113  ;;  %v1128_v25 = vld [vmem:[%s1528_s2 + $0x30] sm:$0xff] }
  0x19   : > { %v557_v12 = vmul.f32 %v555_v11, %v253_v0  ;;  %v490_v57 = vperm.slane %v1109_v56, 0  ;;  %v491_v58 = vperm.slane %v1109_v56, 1  ;;  %v1116_v3 = vld [vmem:[%s1528_s2 + $0x20] sm:$0xff]  ;;  %vm770_vm8 = vcmp.lt.s32.totalorder %v1382_v27, 112 }
  0x1a   : > { %v909_v6 = vld [vmem:[%s1529_s3] sm:$0xff]  ;;  %vm844_vm9 = vcmp.lt.s32.totalorder %v1382_v27, 111  ;;  %vm926_vm10 = vcmask 64512  }
  0x1e   : > { %v256_v1 = vld.sshfl [vmem:[#allocation1] sm:$0xff pattern:$0x75316420]  ;;  %v257_v2 = vld.sshfl [vmem:[#allocation1 + $0x8] sm:$0xff pattern:$0x75316420] }
  0x1f   : > { %260 = vrot.lane.b32.xlu0 %v256_v1, %s1278_s14  ;;  %278 = vst [vmem:[#allocation1] ss:$2 sm:$0xff] %v253_v0  ;;  %v1104_v1 = vld [vmem:[%s1528_s2 + $0x10] sm:$0xff] }
  0x26   : > { %v279_v4 = vld.sshfl [vmem:[#allocation1] sm:$0xff pattern:$0x75316420]  ;;  %v280_v5 = vld.sshfl [vmem:[#allocation1 + $0x8] sm:$0xff pattern:$0x75316420] }
  0x27   : > { %283 = vrot.lane.b32.xlu1 %v279_v4, %s1279_s17  ;;  %262 = vrot.lane.b32.xlu0 %v257_v2, %s1278_s14  ;;  %401 = vst [vmem:[#allocation1] ss:$2 sm:$0xff] %v253_v0  ;;  %v1110_v2 = vld [vmem:[%s1528_s2 + $0x18] sm:$0xff]  ;;  %v1121_v4 = vld [vmem:[%s1527_s1 + $0xa] sm:$0x3] }
  0x28   : > { %v628_v7 = vperm.slane %v1121_v4, 0  ;;  %v629_v8 = vperm.slane %v1121_v4, 1 }
  0x2e   : > { %v402_v9 = vld.sshfl [vmem:[#allocation1] sm:$0xff pattern:$0x75316420]  ;;  %v403_v10 = vld.sshfl [vmem:[#allocation1 + $0x8] sm:$0xff pattern:$0x75316420] }
  0x2f   : > { %285 = vrot.lane.b32.xlu1 %v280_v5, %s1279_s17  ;;  %475 = vst [vmem:[#allocation1] ss:$2 sm:$0xff] %v253_v0  ;;  %406 = vrot.lane.b32.xlu2 %v402_v9, %s1280_s18  ;;  %v1286_v9 = vmov 0   ;;  %s1234_s17 = scalar_lea.hbm %s1532_s6, 32 }
  0x30   : > { %1203 = vset.pattern.permute.xlu1 %v1286_v9  ;;  %1204 = vset.pattern.permute.xlu2 %v1286_v9 }
  0x31   : > { %1205 = vset.pattern.permute.xlu0 %v1286_v9 }
  0x36   : > { %v477_v13 = vld.sshfl [vmem:[#allocation1 + $0x8] sm:$0xff pattern:$0x75316420]  ;;  %v476_v14 = vld.sshfl [vmem:[#allocation1] sm:$0xff pattern:$0x75316420] }
  0x37   : > { %482 = vrot.lane.b32.xlu1 %v477_v13, %s1281_s19  ;;  %480 = vrot.lane.b32.xlu0 %v476_v14, %s1281_s19  ;;  %561 = vst [vmem:[#allocation1] ss:$2 sm:$0xff] %v557_v12  ;;  %s243_s19 = sand.u32 1, %s1268_s22  }
  0x38   : > { %408 = vrot.lane.b32.xlu2 %v403_v10, %s1280_s18  ;;  %s1011_s12 = scalar_lea.sflag [#allocation3], %s243_s19 }
  0x3e   : > { %v1378_v15 = vld.sshfl [vmem:[#allocation1] sm:$0xff pattern:$0x75316420]  ;;  %v1380_v16 = vld.sshfl [vmem:[#allocation1 + $0x8] sm:$0xff pattern:$0x75316420] }
  0x3f   : > { %613 = vst [vmem:[#allocation1] ss:$2 sm:$0xff] %v253_v0 }
  0x46   : > { %v615_v17 = vld.sshfl [vmem:[#allocation1 + $0x8] sm:$0xff pattern:$0x75316420]  ;;  %v614_v18 = vld.sshfl [vmem:[#allocation1] sm:$0xff pattern:$0x75316420] }
  0x47   : > { %620 = vrot.lane.b32.xlu0 %v615_v17, %s1282_s20  ;;  %687 = vst [vmem:[#allocation1] ss:$2 sm:$0xff] %v253_v0  ;;  %618 = vrot.lane.b32.xlu2 %v614_v18, %s1282_s20  ;;  %s1090_s20 = sshll.u32 %s243_s19, 4 }
  0x48   : > { %s245_s10 = scalar_lea.vmem [#allocation2], %s1090_s20 }
  0x49   : > { %s1024_s11 = sshll.u32 %s245_s10, 4  ;;  %s1025_s11 = int_to_ptr.vmem [resolvable:$true] %s1024_s11 }
  0x4e   : > { %v688_v19 = vld.sshfl [vmem:[#allocation1] sm:$0xff pattern:$0x75316420]  ;;  %v689_v20 = vld.sshfl [vmem:[#allocation1 + $0x8] sm:$0xff pattern:$0x75316420] }
  0x4f   : > { %692 = vrot.lane.b32.xlu1 %v688_v19, %s1283_s26  ;;  %761 = vst [vmem:[#allocation1] ss:$2 sm:$0xff] %v253_v0  ;;  %694 = vrot.lane.b32.xlu2 %v689_v20, %s1283_s26  ;;  %s1154_s26 = sshll.u32 %s1343_s25, 4 }
  0x50   : > { %s1022_s9 = scalar_lea.hbm %s1532_s6, %s1154_s26 }
  0x51   : > { %s1026_s25 = sshll.u32 %s1022_s9, 4  ;;  %s1027_s25 = int_to_ptr.hbm [resolvable:$true] %s1026_s25 }
  0x52   : > { %s1228_s13 = sshra.s32 %s1027_s25, 4  ;;  %s1229_s13 = int_to_ptr.hbm [resolvable:$true] %s1228_s13 }
  0x53   : > { %s1230_s14 = scalar_lea.hbm %s1229_s13, 16  ;;  %p1235_p0 = scmp.lt.s32.totalorder %s1229_s13, %s1532_s6 }
  0x54   : > { %p1231_p11 = scmp.ne.s32.totalorder %s1229_s13, %s1230_s14  ;;  %p1236_p1 = scmp.lt.s32.totalorder %s1234_s17, %s1230_s14 }
  0x56   : > { %v763_v21 = vld.sshfl [vmem:[#allocation1 + $0x8] sm:$0xff pattern:$0x75316420]  ;;  %v762_v22 = vld.sshfl [vmem:[#allocation1] sm:$0xff pattern:$0x75316420]  ;;  %p1232_p12 = pnand %p1231_p11, %p1360_p5  ;;  %p1237_p2 = por %p1236_p1, %p1235_p0 }
  0x57   : > { %768 = vrot.lane.b32.xlu1 %v763_v21, %s1284_s28  ;;  %766 = vrot.lane.b32.xlu0 %v762_v22, %s1284_s28  ;;  %835 = vst [vmem:[#allocation1] ss:$2 sm:$0xff] %v253_v0 }
  0x58   : > { %p1233_p13 = pneg %p1232_p12 }
  0x5a   : > { %p1238_p3 = pnand %p1237_p2, %p1233_p13 }
  0x5e   : > { %v837_v23 = vld.sshfl [vmem:[#allocation1 + $0x8] sm:$0xff pattern:$0x75316420]  ;;  %v836_v24 = vld.sshfl [vmem:[#allocation1] sm:$0xff pattern:$0x75316420] }
  0x5f   : > { %842 = vrot.lane.b32.xlu0 %v837_v23, %s1285_s29  ;;  %840 = vrot.lane.b32.xlu2 %v836_v24, %s1285_s29 }
  0x60   : > { %912 = vperm.xlu1 %1203, %v909_v6  }
  0x89   : > { %v407_v28 = vpop.permute.xlu2 %406 }
  0x91   : > { %v261_v26 = vpop.permute.xlu0 %260 }
  0x92   : > { %v409_v41 = vpop.permute.xlu2 %408 }
  0x93   : > { %v411_v46 = vsel %vm410_vm3, %v407_v28, %v409_v41  ;;  %v412_v47 = vsel %vm410_vm3, %v409_v41, %v407_v28 }
  0x94   : > { %v420_v54 = vmul.f32 %v416_v44, %v412_v47  ;;  %v421_v55 = vmul.f32 %v417_v45, %v411_v46  ;;  %v1140_v46 = vld [vmem:[%s1528_s2 + $0x40] sm:$0xff] }
  0x99   : > { %v284_v32 = vpop.permute.xlu1 %283  ;;  %v263_v33 = vpop.permute.xlu0 %262 }
  0x9a   : > { %v267_v34 = vsel %vm266_vm1, %v261_v26, %v263_v33  ;;  %v268_v35 = vsel %vm266_vm1, %v263_v33, %v261_v26  ;;  %v1133_v26 = vld [vmem:[%s1527_s1 + $0xe] sm:$0x3] }
  0x9b   : > { %v275_v36 = vmul.f32 %v271_v30, %v268_v35  ;;  %v276_v37 = vmul.f32 %v272_v31, %v267_v34  ;;  %v776_v28 = vperm.slane %v1133_v26, 0  ;;  %v777_v29 = vperm.slane %v1133_v26, 1 }
  0x9d   : > { %1099 = vmatpush.msk.msra.mxu2 %vm305_vm0, %v275_v36  ;;  %1101 = vmatpush.msk.msra.mxu3 %vm305_vm0, %v276_v37  ;;  %v1134_v36 = vld [vmem:[%s1528_s2 + $0x38] sm:$0xff]  ;;  %v1139_v37 = vld [vmem:[%s1527_s1 + $0x10] sm:$0x3] }
  0x9e   : > { %1100 = vmatmul.msk.f32.vlgmr.msra.gmra.mxu2 %vm301_vm2, %v277_v38  ;;  %1102 = vmatmul.msk.f32.vlgmr.msra.gmra.mxu3 %vm301_vm2, %v277_v38  ;;  %v850_v38 = vperm.slane %v1139_v37, 0  ;;  %v851_v39 = vperm.slane %v1139_v37, 1 }
  0xa1   : > { %v286_v48 = vpop.permute.xlu1 %285  ;;  %v619_v5 = vpop.permute.xlu2 %618 }
  0xa2   : > { %v288_v49 = vsel %vm287_vm4, %v284_v32, %v286_v48  ;;  %v289_v50 = vsel %vm287_vm4, %v286_v48, %v284_v32 }
  0xa3   : > { %v297_v51 = vmul.f32 %v293_v42, %v289_v50  ;;  %v298_v52 = vmul.f32 %v294_v43, %v288_v49 }
  0xa5   : > { %1095 = vmatpush.msk.msra.mxu0 %vm305_vm0, %v297_v51  ;;  %1097 = vmatpush.msk.msra.mxu1 %vm305_vm0, %v298_v52  ;;  %v920_v52 = vld [vmem:[%s1531_s5] sm:$0x3f] }
  0xa6   : > { %1096 = vmatmul.msk.f32.vlgmr.msra.gmra.mxu0 %vm301_vm2, %v1094_v53  ;;  %1098 = vmatmul.msk.f32.vlgmr.msra.gmra.mxu1 %vm301_vm2, %v1094_v53 }
  0xa7   : > { %1105 = vmatpush.msk.msrb.mxu0 %vm305_vm0, %v420_v54  ;;  %1107 = vmatpush.msk.msrb.mxu1 %vm305_vm0, %v421_v55 }
  0xa8   : > { %923 = vperm.xlu2 %1204, %v920_v52  }
  0xa9   : > { %1117 = vmatpush.msk.msra.mxu0 %vm305_vm0, %v1378_v15  ;;  %1119 = vmatpush.msk.msra.mxu1 %vm305_vm0, %v1380_v16  ;;  %v483_v59 = vpop.permute.xlu1 %482  ;;  %v481_v60 = vpop.permute.xlu0 %480  ;;  %v1122_v15 = vld [vmem:[%s1528_s2 + $0x28] sm:$0xff] }
  0xaa   : > { %v485_v61 = vsel %vm484_vm5, %v481_v60, %v483_v59  ;;  %v486_v62 = vsel %vm484_vm5, %v483_v59, %v481_v60  ;;  %v1127_v16 = vld [vmem:[%s1527_s1 + $0xc] sm:$0x3]  ;;  %v695_v17 = vpop.permute.xlu2 %694 }
  0xab   : > { %v494_v63 = vmul.f32 %v490_v57, %v486_v62  ;;  %v495_v0 = vmul.f32 %v491_v58, %v485_v61  ;;  %v702_v18 = vperm.slane %v1127_v16, 0  ;;  %v703_v19 = vperm.slane %v1127_v16, 1 }
  0xad   : > { %1111 = vmatpush.msk.msrb.mxu2 %vm305_vm0, %v494_v63  ;;  %1113 = vmatpush.msk.msrb.mxu3 %vm305_vm0, %v495_v0 }
  0xae   : > { %1106 = vmatmul.msk.f32.vlgmr.msrb.gmra.mxu0 %vm301_vm2, %v1104_v1  ;;  %1108 = vmatmul.msk.f32.vlgmr.msrb.gmra.mxu1 %vm301_vm2, %v1104_v1 }
  0xaf   : > { %1112 = vmatmul.msk.f32.vlgmr.msrb.gmra.mxu2 %vm301_vm2, %v1110_v2  ;;  %1114 = vmatmul.msk.f32.vlgmr.msrb.gmra.mxu3 %vm301_vm2, %v1110_v2 }
  0xb6   : > { %1118 = vmatmul.msk.f32.vlgmr.msra.gmra.mxu0 %vm301_vm2, %v1116_v3  ;;  %1120 = vmatmul.msk.f32.vlgmr.msra.gmra.mxu1 %vm301_vm2, %v1116_v3 }
  0xb9   : > { %v621_v10 = vpop.permute.xlu0 %620  ;;  %v841_v40 = vpop.permute.xlu2 %840 }
  0xba   : > { %v623_v11 = vsel %vm622_vm6, %v619_v5, %v621_v10  ;;  %v624_v12 = vsel %vm622_vm6, %v621_v10, %v619_v5 }
  0xbb   : > { %v632_v13 = vmul.f32 %v628_v7, %v623_v11  ;;  %v633_v14 = vmul.f32 %v629_v8, %v624_v12 }
  0xbd   : > { %1123 = vmatpush.msk.msra.mxu2 %vm305_vm0, %v632_v13  ;;  %1125 = vmatpush.msk.msra.mxu3 %vm305_vm0, %v633_v14 }
  0xbe   : > { %1124 = vmatmul.msk.f32.vlgmr.msra.gmra.mxu2 %vm301_vm2, %v1122_v15  ;;  %1126 = vmatmul.msk.f32.vlgmr.msra.gmra.mxu3 %vm301_vm2, %v1122_v15 }
  0xc1   : > { %v693_v20 = vpop.permute.xlu1 %692 }
  0xc2   : > { %v697_v21 = vsel %vm696_vm7, %v693_v20, %v695_v17  ;;  %v698_v22 = vsel %vm696_vm7, %v695_v17, %v693_v20 }
  0xc3   : > { %v706_v23 = vmul.f32 %v702_v18, %v697_v21  ;;  %v707_v24 = vmul.f32 %v703_v19, %v698_v22  ;;  %v919_v22 = vld [vmem:[%s1530_s4] sm:$0x3f] }
  0xc5   : > { %1129 = vmatpush.msk.msrb.mxu0 %vm305_vm0, %v706_v23  ;;  %1131 = vmatpush.msk.msrb.mxu1 %vm305_vm0, %v707_v24 }
  0xc6   : > { %1130 = vmatmul.msk.f32.vlgmr.msrb.gmra.mxu0 %vm301_vm2, %v1128_v25  ;;  %1132 = vmatmul.msk.f32.vlgmr.msrb.gmra.mxu1 %vm301_vm2, %v1128_v25 }
  0xc9   : > { %v769_v30 = vpop.permute.xlu1 %768  ;;  %v767_v31 = vpop.permute.xlu0 %766 }
  0xca   : > { %v771_v32 = vsel %vm770_vm8, %v767_v31, %v769_v30  ;;  %v772_v33 = vsel %vm770_vm8, %v769_v30, %v767_v31 }
  0xcb   : > { %v780_v34 = vmul.f32 %v776_v28, %v771_v32  ;;  %v781_v35 = vmul.f32 %v777_v29, %v772_v33 }
  0xcd   : > { %1135 = vmatpush.msk.msrb.mxu2 %vm305_vm0, %v780_v34  ;;  %1137 = vmatpush.msk.msrb.mxu3 %vm305_vm0, %v781_v35 }
  0xce   : > { %1136 = vmatmul.msk.f32.vlgmr.msrb.gmra.mxu2 %vm301_vm2, %v1134_v36  ;;  %1138 = vmatmul.msk.f32.vlgmr.msrb.gmra.mxu3 %vm301_vm2, %v1134_v36 }
  0xd1   : > { %v843_v41 = vpop.permute.xlu0 %842 }
  0xd2   : > { %v845_v42 = vsel %vm844_vm9, %v841_v40, %v843_v41  ;;  %v846_v43 = vsel %vm844_vm9, %v843_v41, %v841_v40  ;;  %v913_v13 = vpop.permute.xlu1 %912 }
  0xd3   : > { %v854_v44 = vmul.f32 %v850_v38, %v845_v42  ;;  %v855_v45 = vmul.f32 %v851_v39, %v846_v43 }
  0xd5   : > { %1141 = vmatpush.msk.msra.mxu0 %vm305_vm0, %v854_v44  ;;  %1143 = vmatpush.msk.msra.mxu1 %vm305_vm0, %v855_v45 }
  0xd6   : > { %1142 = vmatmul.msk.f32.vlgmr.msra.gmra.mxu0 %vm301_vm2, %v1140_v46  ;;  %1144 = vmatmul.msk.f32.vlgmr.msra.gmra.mxu1 %vm301_vm2, %v1140_v46 }
 0x102   : > { %v924_v23 = vpop.permute.xlu2 %923 }
 0x121   : > { %v378_v48 = vpop.f32.mrf.mxu2  ;;  %v398_v49 = vpop.f32.mrf.mxu3 }
 0x123   : > { %v329_v27 = vpop.f32.mrf.mxu0  ;;  %v349_v47 = vpop.f32.mrf.mxu1 }
 0x124   : > { %v379_v53 = vadd.f32 %v378_v48, %v329_v27  ;;  %v399_v54 = vadd.f32 %v398_v49, %v349_v47 }
 0x12b   : > { %v450_v50 = vpop.f32.mrf.mxu0  ;;  %v470_v51 = vpop.f32.mrf.mxu1 }
 0x12c   : > { %v473_v57 = vadd.f32 %v450_v50, %v379_v53  ;;  %v474_v58 = vadd.f32 %v470_v51, %v399_v54 }
 0x132   : > { %v524_v55 = vpop.f32.mrf.mxu2  ;;  %v544_v56 = vpop.f32.mrf.mxu3 }
 0x133   : > { %v588_v59 = vpop.f32.mrf.mxu0  ;;  %v608_v60 = vpop.f32.mrf.mxu1  ;;  %v547_v61 = vadd.f32 %v524_v55, %v473_v57  ;;  %v548_v62 = vadd.f32 %v544_v56, %v474_v58 }
 0x135   : > { %v611_v1 = vadd.f32 %v588_v59, %v547_v61  ;;  %v612_v2 = vadd.f32 %v608_v60, %v548_v62 }
 0x141   : > { %v662_v63 = vpop.f32.mrf.mxu2  ;;  %v682_v0 = vpop.f32.mrf.mxu3 }
 0x142   : > { %v685_v5 = vadd.f32 %v662_v63, %v611_v1  ;;  %v686_v6 = vadd.f32 %v682_v0, %v612_v2 }
 0x143   : > { %v736_v3 = vpop.f32.mrf.mxu0  ;;  %v756_v4 = vpop.f32.mrf.mxu1 }
 0x144   : > { %v759_v7 = vadd.f32 %v736_v3, %v685_v5  ;;  %v760_v8 = vadd.f32 %v756_v4, %v686_v6 }
 0x151   : > { %v810_v9 = vpop.f32.mrf.mxu2  ;;  %v830_v10 = vpop.f32.mrf.mxu3 }
 0x152   : > { %v833_v11 = vadd.f32 %v810_v9, %v759_v7  ;;  %v834_v12 = vadd.f32 %v830_v10, %v760_v8 }
 0x153   : > { %v884_v14 = vpop.f32.mrf.mxu0  ;;  %v904_v15 = vpop.f32.mrf.mxu1 }
 0x154   : > { %v907_v16 = vadd.f32 %v884_v14, %v833_v11  ;;  %v908_v17 = vadd.f32 %v904_v15, %v834_v12 }
 0x156   : > { %v915_v18 = vadd.f32 %v913_v13, %v907_v16  ;;  %v916_v19 = vadd.f32 %v913_v13, %v908_v17 }
 0x158   : > { %v917_v20 = vmax.f32 %v915_v18, 0.0  ;;  %v918_v21 = vmax.f32 %v916_v19, 0.0 }
 0x15a   : > { %945 = vmatpush.msra.mxu2 %v917_v20  ;;  %965 = vmatpush.msra.mxu3 %v918_v21 }
 0x15b   : > { %1145 = vmatmul.msk.f32.vlgmr.msra.gmra.mxu2 %vm926_vm10, %v919_v22  ;;  %1146 = vmatmul.msk.f32.vlgmr.msra.gmra.mxu3 %vm926_vm10, %v919_v22 }
 0x1de   : > { %v967_v24 = vpop.f32.mrf.mxu3  ;;  %v947_v25 = vpop.f32.mrf.mxu2 }
 0x1df   : > { %v968_v26 = vadd.f32 %v967_v24, %v924_v23  ;;  %v948_v28 = vadd.f32 %v947_v25, %v924_v23 }
 0x1e1   : > { %v1148_v29 = vmul.f32 -1.442695, %v968_v26  ;;  %v1147_v30 = vmul.f32 -1.442695, %v948_v28 }
 0x1e3   : > { %1206 = vpow2.f32 %v1148_v29 }
 0x1e4   : > { %1208 = vpow2.f32 %v1147_v30 }
 0x1e9   : > { %v1207_v31 = vpop.eup %1206 }
 0x1ea   : > { %v1209_v32 = vpop.eup %1208  ;;  %v977_v33 = vadd.f32 1.0, %v1207_v31 }
 0x1eb   : > { %v976_v34 = vadd.f32 1.0, %v1209_v32 }
 0x1ec   : > { %1210 = vrcp.f32 %v977_v33  ;;  %v1004_v41 = vand.u32 2147483648, %v977_v33  ;;  %v1002_v44 = vand.u32 2147483647, %v977_v33  ;;  %vm998_vm13 = vweird.f32 %v977_v33 }
 0x1ed   : > { %1212 = vrcp.f32 %v976_v34  ;;  %v989_v42 = vand.u32 2147483648, %v976_v34  ;;  %v987_v46 = vand.u32 2147483647, %v976_v34  ;;  %vm983_vm14 = vweird.f32 %v976_v34 }
 0x1ee   : > { %v1005_v48 = vor.u32 1.1754944e-38, %v1004_v41  ;;  %vm1003_vm1 = vcmp.eq.f32.partialorder %v1002_v44, 8.507059e+37 }
 0x1ef   : > { %v990_v49 = vor.u32 1.1754944e-38, %v989_v42  ;;  %vm988_vm2 = vcmp.eq.f32.partialorder %v987_v46, 8.507059e+37 }
 0x1f2   : > { %v1211_v35 = vpop.eup %1210 }
 0x1f3   : > { %v1213_v36 = vpop.eup %1212  ;;  %v994_v37 = vmul.f32 %v1211_v35, %v977_v33  ;;  %vm999_vm11 = vweird.f32 %v1211_v35 }
 0x1f4   : > { %v979_v38 = vmul.f32 %v1213_v36, %v976_v34  ;;  %vm984_vm12 = vweird.f32 %v1213_v36  ;;  %vm1000_vm15 = vmor %vm998_vm13, %vm999_vm11 }
 0x1f5   : > { %v995_v39 = vsub.f32 1.0, %v994_v37  ;;  %vm985_vm0 = vmor %vm983_vm14, %vm984_vm12 }
 0x1f6   : > { %v980_v40 = vsub.f32 1.0, %v979_v38 }
 0x1f7   : > { %v996_v43 = vmul.f32 %v1211_v35, %v995_v39 }
 0x1f8   : > { %v981_v45 = vmul.f32 %v1213_v36, %v980_v40 }
 0x1f9   : > { %v997_v27 = vadd.f32 %v1211_v35, %v996_v43 }
 0x1fa   : > { %v982_v47 = vadd.f32 %v1213_v36, %v981_v45 }
 0x1fb   : > { %v1001_v50 = vsel %vm1000_vm15, %v1211_v35, %v997_v27 }
 0x1fc   : > { %v986_v51 = vsel %vm985_vm0, %v1213_v36, %v982_v47  ;;  %v1006_v52 = vsel %vm1003_vm1, %v1005_v48, %v1001_v50 }
 0x1fd   : > { %v991_v53 = vsel %vm988_vm2, %v990_v49, %v986_v51  ;;  %1009 = vst [vmem:[%s245_s10 + $0x8] sm:$0x3f] %v1006_v52 }
 0x1fe   : > { %1008 = vst [vmem:[%s245_s10] sm:$0x3f] %v991_v53 }
 0x1ff   : > { %1241 = shalt.err (!%p1238_p3)
}
 0x200   : > { %1155 = dma.vmem_to_hbm [thread:$0]  (%p1360_p5), %s1025_s11, 256, %s1027_s25, %s1011_s12  }
 0x201 PF: > { %p1161_p4 = scmp.ge.s32.totalorder %s1276_s24, 2  ;;  %s1038_s19 = sand.u32 1, %s1264_s21  }
 0x202   : > { %s1039_s26 = scalar_lea.sflag [#allocation3], %s1038_s19 }
 0x203   : > { %p1158_p7 = pnand %p1161_p4, %p1364_p6 }
 0x205   : > { %p1159_p8 = pneg %p1158_p7 }
 0x207   : > { %1259 = dma.done.wait (%p1159_p8), %s1039_s26, 256  }
 0x208   : > { %1261 = vsyncadd (%p1159_p8), %s1039_s26, 4294967040  ;;  %p16_p9 = scmp.ge.s32.totalorder %s1347_s27, 4   ;;  %s1535_s21 = smov %s1268_s22 }
 0x209   : > { %s1536_s22 = smov %s1272_s23  ;;  %s1537_s23 = smov %s1358_s30 }
 0x20a   : > { %s1538_s24 = smov %s1347_s27  ;;  %18 = sbr.rel (!%p16_p9) target bundleno = 3 (0x3), region = 95 }
 0x20f   :  { %1045 = vsyncpa [#allocation3], 1 }
 0x210   :  { %1047 = vsyncpa [#allocation3 + $0x1], 1 }

</bundles_post_ra>
